<compile_context>
chip_gen: v5e
topology: v5e:2x2
jax: 0.10.0
libtpu: 0.0.40
codegen_flags: <defaults>
</compile_context>

<pallas_src>
import functools
import re

import jax
import jax.numpy as jnp
from jax.experimental import pallas as pl
from jax.experimental.pallas import tpu as pltpu

C_PAD = 128          # padded classifier width (one lane tile)
NUM_CLASSES = 2
MB = 1024 * 1024


# --------------------------------------------------------------------------
# Generation / VMEM introspection
# --------------------------------------------------------------------------
def _chip_generation():
    """Best-effort TPU generation (5, 6, 7, ...). Defaults to 6."""
    try:
        kind = jax.devices()[0].device_kind.lower()
    except Exception:
        return 6
    m = re.search(r"v(\d+)", kind)
    return int(m.group(1)) if m else 6


def _use_bf16_tanh(gen):
    # v6e/v7x have bf16 EUP; v5e (and older) would just upcast again.
    return gen >= 6


def _vmem_capacity_bytes(gen):
    try:
        return int(pltpu.get_tpu_info().vmem_capacity_bytes)
    except Exception:
        return (64 if gen >= 7 else 128) * MB


def _vmem_limit_bytes(gen, vmem_cap):
    desired = 40 * MB if gen >= 7 else 96 * MB
    return int(min(desired, vmem_cap * 3 // 4))


def _round_up(x, m):
    return ((x + m - 1) // m) * m


def _resident_spec(shape, index_map):
    """Single-buffered BlockSpec for blocks whose index map is constant."""
    try:
        return pl.BlockSpec(shape, index_map, pipeline_mode=pl.Buffered(1))
    except (TypeError, AttributeError):   # older JAX without pipeline_mode
        return pl.BlockSpec(shape, index_map)


def _select_tiles(B, S, H, gen, vmem_cap):
    """H- and generation-aware tile sizes.

    Per grid step the live set is roughly
      per_row = f32 x tile (double-buffered, 8H) + bf16 x (2H)
              + f32 fusion pre-act (4H) + bf16 fusion (2H) + f32 logits (4*C_PAD)
    plus the single-buffered resident weights. Keep it within ~1/4 of
    physical VMEM.
    """
    s_align = 32 if gen >= 6 else 16      # bf16 sublanes; M multiple of 256/128
    weight_bytes = 2 * H * H + 2 * H * C_PAD + 4 * H + 4 * C_PAD
    per_row = 16 * H + 4 * C_PAD
    work_budget = vmem_cap // 4
    m_max = max(8 * s_align, (work_budget - weight_bytes) // per_row)

    b_pad = _round_up(B, 8)
    tile_b = min(b_pad, 64)
    if gen >= 7 and b_pad >= 16:
        # At least two B tiles so the "parallel" axis can span both TensorCores.
        tile_b = min(tile_b, _round_up(pl.cdiv(b_pad, 2), 8))
    # Keep M = tile_b * tile_s within budget (shrink tile_b first if needed).
    tile_b = max(8, min(tile_b, (m_max // s_align) // 8 * 8))
    s_pad = _round_up(S, s_align)
    tile_s = min(s_pad, max(s_align, (m_max // tile_b) // s_align * s_align))
    return tile_b, tile_s


# --------------------------------------------------------------------------
# Kernel
# --------------------------------------------------------------------------
def _embedding_prob_kernel(x_ref, w1_ref, b1_ref, wc_ref, bc_ref, out_ref, *,
                           bf16_tanh, true_seq_len):
    # x_ref : (tileB, tileS, H) f32      w1_ref: (H, H) bf16   b1_ref: (1, H) f32
    # wc_ref: (H, C_PAD) bf16            bc_ref: (1, C_PAD) f32
    # out_ref: (tileB, C_PAD) f32 -- resident across the S axis (max accumulator).
    s = pl.program_id(1)

    @pl.when(s == 0)
    def _init():
        out_ref[...] = jnp.full(out_ref.shape, -jnp.inf, out_ref.dtype)

    tile_b, tile_s, h_dim = x_ref.shape

    # Cast the streamed f32 tile to bf16 in-kernel and flatten (tileB, tileS)
    # into one fat M x H matmul (fills the MXU even when S is small).
    x = x_ref[...].astype(jnp.bfloat16).reshape(tile_b * tile_s, h_dim)

    # Fusion: tanh(x @ W1 + b1); bf16 MXU inputs, f32 accumulate.
    h = jnp.dot(x, w1_ref[...], preferred_element_type=jnp.float32)
    h = h + b1_ref[...]
    if bf16_tanh:
        h = jnp.tanh(h.astype(jnp.bfloat16))            # bf16 EUP (v6e/v7x)
    else:
        h = jnp.tanh(h).astype(jnp.bfloat16)            # f32 EUP (v5e), bf16 store

    # Classifier head (padded to C_PAD lanes; pad cols have zero weight/bias).
    logits = jnp.dot(h, wc_ref[...], preferred_element_type=jnp.float32)
    logits = (logits + bc_ref[...]).reshape(tile_b, tile_s, C_PAD)

    if true_seq_len is not None:
        # Mask padded sequence rows so they cannot win the running max.
        seq_idx = s * tile_s + jax.lax.broadcasted_iota(jnp.int32, logits.shape, 1)
        logits = jnp.where(seq_idx < true_seq_len, logits, -jnp.inf)

    # Per-batch max over this S tile, accumulated into the resident output.
    out_ref[...] = jnp.maximum(out_ref[...], jnp.max(logits, axis=1))

    @pl.when(s == pl.num_programs(1) - 1)
    def _finalize():
        maxed = out_ref[...]                                     # (tileB, C_PAD)
        col = jax.lax.broadcasted_iota(jnp.int32, maxed.shape, 1)
        valid = col < NUM_CLASSES
        masked = jnp.where(valid, maxed, -jnp.inf)
        m = jnp.max(masked, axis=-1, keepdims=True)
        e = jnp.where(valid, jnp.exp(masked - m), 0.0)
        denom = jnp.sum(e, axis=-1, keepdims=True)
        out_ref[...] = e / denom                        # exact; once per B tile


# --------------------------------------------------------------------------
# Wrapper
# --------------------------------------------------------------------------
def embedding_prob_forward(hidden_states, w1, b1, wc, bc, *,
                           tile_b=None, tile_s=None):
    """hidden_states: (B, S, H).
    w1: (H, H) torch-style (out, in); b1: (H,)
    wc: (2, H) torch-style (out, in); bc: (2,)
    Returns softmax probabilities of shape (B, 2), float32.
    """
    B, S, H = hidden_states.shape
    gen = _chip_generation()
    vmem_cap = _vmem_capacity_bytes(gen)

    auto_tb, auto_ts = _select_tiles(B, S, H, gen, vmem_cap)
    tile_b = auto_tb if tile_b is None else max(8, _round_up(int(tile_b), 8))
    tile_s = auto_ts if tile_s is None else max(16, _round_up(int(tile_s), 16))

    # Pad B/S to tile multiples (exact grid division, no ragged last block).
    B_pad = _round_up(B, tile_b)
    S_pad = _round_up(S, tile_s)
    x = hidden_states
    if (B_pad, S_pad) != (B, S):
        x = jnp.pad(x, ((0, B_pad - B), (0, S_pad - S), (0, 0)))

    # Weights/biases: bf16 for the MXU, f32 biases added post-accumulate.
    w1_t = jnp.asarray(w1, jnp.bfloat16).T                           # (H, H)
    b1_r = jnp.asarray(b1, jnp.float32).reshape(1, H)                # (1, H)
    wc_t = jnp.zeros((H, C_PAD), jnp.bfloat16).at[:, :NUM_CLASSES].set(
        jnp.asarray(wc, jnp.bfloat16).T)                             # (H, C_PAD)
    bc_r = jnp.zeros((1, C_PAD), jnp.float32).at[:, :NUM_CLASSES].set(
        jnp.asarray(bc, jnp.float32).reshape(1, NUM_CLASSES))        # (1, C_PAD)

    kernel = functools.partial(
        _embedding_prob_kernel,
        bf16_tanh=_use_bf16_tanh(gen),
        true_seq_len=(S if S_pad != S else None))

    grid = (B_pad // tile_b, S_pad // tile_s)

    out_padded = pl.pallas_call(
        kernel,
        out_shape=jax.ShapeDtypeStruct((B_pad, C_PAD), jnp.float32),
        grid=grid,
        in_specs=[
            pl.BlockSpec((tile_b, tile_s, H), lambda b, s: (b, s, 0)),
            _resident_spec((H, H), lambda b, s: (0, 0)),      # resident weights
            _resident_spec((1, H), lambda b, s: (0, 0)),
            _resident_spec((H, C_PAD), lambda b, s: (0, 0)),
            _resident_spec((1, C_PAD), lambda b, s: (0, 0)),
        ],
        out_specs=pl.BlockSpec((tile_b, C_PAD), lambda b, s: (b, 0)),
        compiler_params=pltpu.CompilerParams(
            dimension_semantics=("parallel", "arbitrary"),
            vmem_limit_bytes=_vmem_limit_bytes(gen, vmem_cap)),
    )(x, w1_t, b1_r, wc_t, bc_r)

    return out_padded[:B, :NUM_CLASSES]
    # TODO(synk): labels branch (log_softmax + NLL loss) omitted; inference only.
    # TODO(synk): very large H (W1 no longer fitting VMEM) would need a K-tiled
    #             matmul grid; out of scope here.


def _reference(hidden_states, w1, b1, wc, bc, bf16_tanh):
    # Mirrors the kernel's bf16-input / f32-accumulate numerics.
    xb = hidden_states.astype(jnp.bfloat16)
    pre = jnp.einsum("bsh,oh->bso", xb, jnp.asarray(w1, jnp.bfloat16),
                     preferred_element_type=jnp.float32) + b1
    if bf16_tanh:
        h = jnp.tanh(pre.astype(jnp.bfloat16))
    else:
        h = jnp.tanh(pre).astype(jnp.bfloat16)
    logits = jnp.einsum("bsh,oh->bso", h, jnp.asarray(wc, jnp.bfloat16),
                        preferred_element_type=jnp.float32) + bc
    logits = jnp.max(logits, axis=1)
    return jax.nn.softmax(logits, axis=-1)


if __name__ == "__main__":
    B, S, H = 2, 24, 32
    key = jax.random.PRNGKey(0)
    kx, kw1, kwc = jax.random.split(key, 3)

    hidden_states = jax.random.normal(kx, (B, S, H), dtype=jnp.float32)

    # Deterministic init matching _init_weights: weight ~ N(0, 0.02), bias = 0.
    w1 = 0.02 * jax.random.normal(kw1, (H, H), dtype=jnp.float32)   # fusion.dense.weight (out, in)
    b1 = jnp.zeros((H,), jnp.float32)                               # fusion.dense.bias
    wc = 0.02 * jax.random.normal(kwc, (NUM_CLASSES, H), dtype=jnp.float32)  # classifcation.weight
    bc = jnp.zeros((NUM_CLASSES,), jnp.float32)                     # classifcation.bias

    ref = _reference(hidden_states, w1, b1, wc, bc,
                     _use_bf16_tanh(_chip_generation()))

    # 1) Auto tile selection (single S step; exercises B/S padding + seq mask).
    out_auto = jax.block_until_ready(
        embedding_prob_forward(hidden_states, w1, b1, wc, bc))
    # 2) Forced small tiles (multi-step running max + seq mask on last step).
    out_tiled = jax.block_until_ready(
        embedding_prob_forward(hidden_states, w1, b1, wc, bc, tile_b=8, tile_s=16))

    for out in (out_auto, out_tiled):
        assert out.shape == (B, NUM_CLASSES)
        assert jnp.allclose(out, ref, atol=2e-3, rtol=2e-3), (out, ref)
        assert jnp.allclose(jnp.sum(out, axis=-1), 1.0, atol=1e-3)
    print("KERNEL_OK")
</pallas_src>

<mosaic_0001>
module attributes {stable_mosaic.version = 11 : i64} {
  func.func @_embedding_prob_kernel(%arg0: i32, %arg1: i32, %arg2: memref<8x32x32xf32, #tpu.memory_space<vmem>>, %arg3: memref<32x32xbf16, #tpu.memory_space<vmem>>, %arg4: memref<1x32xf32, #tpu.memory_space<vmem>>, %arg5: memref<32x128xbf16, #tpu.memory_space<vmem>>, %arg6: memref<1x128xf32, #tpu.memory_space<vmem>>, %arg7: memref<8x128xf32, #tpu.memory_space<vmem>>) attributes {dimension_semantics = [#tpu.dimension_semantics<parallel>, #tpu.dimension_semantics<arbitrary>], iteration_bounds = array<i64: 1, 1>, scalar_prefetch = 0 : i64, scratch_operands = 0 : i64, tpu.core_type = #tpu.core_type<tc>, window_params = [{transform_indices = @transform_0, window_bounds = array<i64: 8, 32, 32>}, {pipeline_mode = #tpu.pipeline_mode<synchronous>, transform_indices = @transform_1, window_bounds = array<i64: 32, 32>}, {pipeline_mode = #tpu.pipeline_mode<synchronous>, transform_indices = @transform_2, window_bounds = array<i64: 1, 32>}, {pipeline_mode = #tpu.pipeline_mode<synchronous>, transform_indices = @transform_3, window_bounds = array<i64: 32, 128>}, {pipeline_mode = #tpu.pipeline_mode<synchronous>, transform_indices = @transform_4, window_bounds = array<i64: 1, 128>}, {transform_indices = @transform_5, window_bounds = array<i64: 8, 128>}]} {
    %c0_i32 = arith.constant 0 : i32
    %0 = arith.cmpi eq, %arg1, %c0_i32 : i32
    %1 = arith.extui %0 : i1 to i32
    %c0_i32_0 = arith.constant 0 : i32
    %2 = arith.cmpi ne, %1, %c0_i32_0 : i32
    scf.if %2 {
      %cst_20 = arith.constant 0xFF800000 : f32
      %34 = vector.broadcast %cst_20 : f32 to vector<8x128xf32>
      %c0_21 = arith.constant 0 : index
      %c0_22 = arith.constant 0 : index
      %35 = vector.load %arg7[%c0_21, %c0_22] : memref<8x128xf32, #tpu.memory_space<vmem>>, vector<8x128xf32>
      tpu.vector_store %arg7[%c0_21, %c0_22], %34 {strides = array<i32>} : memref<8x128xf32, #tpu.memory_space<vmem>>, vector<8x128xf32>,
    } else {
    }
    %c0 = arith.constant 0 : index
    %c0_1 = arith.constant 0 : index
    %c0_2 = arith.constant 0 : index
    %3 = vector.load %arg2[%c0, %c0_1, %c0_2] : memref<8x32x32xf32, #tpu.memory_space<vmem>>, vector<8x32x32xf32>
    %4 = arith.truncf %3 : vector<8x32x32xf32> to vector<8x32x32xbf16>
    %5 = vector.shape_cast %4 : vector<8x32x32xbf16> to vector<256x32xbf16>
    %c0_3 = arith.constant 0 : index
    %c0_4 = arith.constant 0 : index
    %6 = vector.load %arg3[%c0_3, %c0_4] : memref<32x32xbf16, #tpu.memory_space<vmem>>, vector<32x32xbf16>
    %cst = arith.constant dense<0.000000e+00> : vector<256x32xf32>
    %7 = tpu.matmul %5, %6, %cst {dimension_numbers = #tpu.dot_dimension_numbers<[1], [0], [0], [1], [0, 0, 1, 1], [], []>} : vector<256x32xbf16>, vector<32x32xbf16>, vector<256x32xf32> -> vector<256x32xf32>
    %c0_5 = arith.constant 0 : index
    %c0_6 = arith.constant 0 : index
    %8 = vector.load %arg4[%c0_5, %c0_6] : memref<1x32xf32, #tpu.memory_space<vmem>>, vector<1x32xf32>
    %9 = vector.broadcast %8 : vector<1x32xf32> to vector<256x32xf32>
    %10 = arith.addf %7, %9 : vector<256x32xf32>
    %11 = arith.truncf %10 : vector<256x32xf32> to vector<256x32xbf16>
    %12 = math.tanh %11 : vector<256x32xbf16>
    %c0_7 = arith.constant 0 : index
    %c0_8 = arith.constant 0 : index
    %13 = vector.load %arg5[%c0_7, %c0_8] : memref<32x128xbf16, #tpu.memory_space<vmem>>, vector<32x128xbf16>
    %cst_9 = arith.constant dense<0.000000e+00> : vector<256x128xf32>
    %14 = tpu.matmul %12, %13, %cst_9 {dimension_numbers = #tpu.dot_dimension_numbers<[1], [0], [0], [1], [0, 0, 1, 1], [], []>} : vector<256x32xbf16>, vector<32x128xbf16>, vector<256x128xf32> -> vector<256x128xf32>
    %c0_10 = arith.constant 0 : index
    %c0_11 = arith.constant 0 : index
    %15 = vector.load %arg6[%c0_10, %c0_11] : memref<1x128xf32, #tpu.memory_space<vmem>>, vector<1x128xf32>
    %16 = vector.broadcast %15 : vector<1x128xf32> to vector<256x128xf32>
    %17 = arith.addf %14, %16 : vector<256x128xf32>
    %18 = vector.shape_cast %17 : vector<256x128xf32> to vector<8x32x128xf32>
    %c32_i32 = arith.constant 32 : i32
    %19 = arith.muli %arg1, %c32_i32 : i32
    %20 = tpu.iota {dimensions = array<i32: 1>} : vector<8x32x128xi32>
    %21 = vector.broadcast %19 : i32 to vector<8x32x128xi32>
    %22 = arith.addi %21, %20 : vector<8x32x128xi32>
    %c24_i32 = arith.constant 24 : i32
    %23 = vector.broadcast %c24_i32 : i32 to vector<8x32x128xi32>
    %24 = arith.cmpi slt, %22, %23 : vector<8x32x128xi32>
    %cst_12 = arith.constant 0xFF800000 : f32
    %25 = vector.broadcast %cst_12 : f32 to vector<8x32x128xf32>
    %26 = arith.select %24, %18, %25 : vector<8x32x128xi1>, vector<8x32x128xf32>
    %c0_13 = arith.constant 0 : index
    %c0_14 = arith.constant 0 : index
    %27 = vector.load %arg7[%c0_13, %c0_14] : memref<8x128xf32, #tpu.memory_space<vmem>>, vector<8x128xf32>
    %cst_15 = arith.constant dense<0xFF800000> : vector<8x128xf32>
    %28 = vector.multi_reduction <maximumf>, %26, %cst_15 [1] : vector<8x32x128xf32> to vector<8x128xf32>
    %29 = arith.maximumf %27, %28 : vector<8x128xf32>
    %c0_16 = arith.constant 0 : index
    %c0_17 = arith.constant 0 : index
    %30 = vector.load %arg7[%c0_16, %c0_17] : memref<8x128xf32, #tpu.memory_space<vmem>>, vector<8x128xf32>
    tpu.vector_store %arg7[%c0_16, %c0_17], %29 {strides = array<i32>} : memref<8x128xf32, #tpu.memory_space<vmem>>, vector<8x128xf32>,
    %c0_i32_18 = arith.constant 0 : i32
    %31 = arith.cmpi eq, %arg1, %c0_i32_18 : i32
    %32 = arith.extui %31 : i1 to i32
    %c0_i32_19 = arith.constant 0 : i32
    %33 = arith.cmpi ne, %32, %c0_i32_19 : i32
    scf.if %33 {
      %c0_20 = arith.constant 0 : index
      %c0_21 = arith.constant 0 : index
      %34 = vector.load %arg7[%c0_20, %c0_21] : memref<8x128xf32, #tpu.memory_space<vmem>>, vector<8x128xf32>
      %35 = tpu.iota {dimensions = array<i32: 1>} : vector<8x128xi32>
      %c2_i32 = arith.constant 2 : i32
      %36 = vector.broadcast %c2_i32 : i32 to vector<8x128xi32>
      %37 = arith.cmpi slt, %35, %36 : vector<8x128xi32>
      %cst_22 = arith.constant 0xFF800000 : f32
      %38 = vector.broadcast %cst_22 : f32 to vector<8x128xf32>
      %39 = arith.select %37, %34, %38 : vector<8x128xi1>, vector<8x128xf32>
      %cst_23 = arith.constant dense<0xFF800000> : vector<8xf32>
      %40 = vector.multi_reduction <maximumf>, %39, %cst_23 [1] : vector<8x128xf32> to vector<8xf32>
      %41 = vector.shape_cast %40 : vector<8xf32> to vector<8x1xf32>
      %42 = vector.broadcast %41 : vector<8x1xf32> to vector<8x128xf32>
      %43 = arith.subf %39, %42 : vector<8x128xf32>
      %44 = math.exp %43 : vector<8x128xf32>
      %cst_24 = arith.constant 0.000000e+00 : f32
      %45 = vector.broadcast %cst_24 : f32 to vector<8x128xf32>
      %46 = arith.select %37, %44, %45 : vector<8x128xi1>, vector<8x128xf32>
      %cst_25 = arith.constant dense<0.000000e+00> : vector<8xf32>
      %47 = vector.multi_reduction <add>, %46, %cst_25 [1] : vector<8x128xf32> to vector<8xf32>
      %48 = vector.shape_cast %47 : vector<8xf32> to vector<8x1xf32>
      %49 = vector.broadcast %48 : vector<8x1xf32> to vector<8x128xf32>
      %50 = arith.divf %46, %49 : vector<8x128xf32>
      %c0_26 = arith.constant 0 : index
      %c0_27 = arith.constant 0 : index
      %51 = vector.load %arg7[%c0_26, %c0_27] : memref<8x128xf32, #tpu.memory_space<vmem>>, vector<8x128xf32>
      tpu.vector_store %arg7[%c0_26, %c0_27], %50 {strides = array<i32>} : memref<8x128xf32, #tpu.memory_space<vmem>>, vector<8x128xf32>,
    } else {
    }
    return
  }
  func.func @transform_0(%arg0: i32, %arg1: i32) -> (i32, i32, i32) {
    %c0_i32 = arith.constant 0 : i32
    %c0_i32_0 = arith.constant 0 : i32
    return %arg0, %arg1, %c0_i32 : i32, i32, i32
  }
  func.func @transform_1(%arg0: i32, %arg1: i32) -> (i32, i32) {
    %c0_i32 = arith.constant 0 : i32
    %c0_i32_0 = arith.constant 0 : i32
    %c0_i32_1 = arith.constant 0 : i32
    return %c0_i32, %c0_i32_0 : i32, i32
  }
  func.func @transform_2(%arg0: i32, %arg1: i32) -> (i32, i32) {
    %c0_i32 = arith.constant 0 : i32
    %c0_i32_0 = arith.constant 0 : i32
    %c0_i32_1 = arith.constant 0 : i32
    return %c0_i32, %c0_i32_0 : i32, i32
  }
  func.func @transform_3(%arg0: i32, %arg1: i32) -> (i32, i32) {
    %c0_i32 = arith.constant 0 : i32
    %c0_i32_0 = arith.constant 0 : i32
    %c0_i32_1 = arith.constant 0 : i32
    return %c0_i32, %c0_i32_0 : i32, i32
  }
  func.func @transform_4(%arg0: i32, %arg1: i32) -> (i32, i32) {
    %c0_i32 = arith.constant 0 : i32
    %c0_i32_0 = arith.constant 0 : i32
    %c0_i32_1 = arith.constant 0 : i32
    return %c0_i32, %c0_i32_0 : i32, i32
  }
  func.func @transform_5(%arg0: i32, %arg1: i32) -> (i32, i32) {
    %c0_i32 = arith.constant 0 : i32
    %c0_i32_0 = arith.constant 0 : i32
    return %arg0, %c0_i32 : i32, i32
  }
}

</mosaic_0001>

<bundles_post_ra>
// kernel: tpu_custom_call.1
= control target key start
LH: loop header
LB: loop body
LE: loop exit
PB: predicated region body
PF: predicated region fallthrough
CT: control target
= control target key end

     0   :  { %10 = vsyncpa [#allocation3], 0  ;;  %s1212_s0 = inlined_call_operand.hbm [shape: f32[8,32,32], index: 0, kind: input, shape index: {}]   ;;  %s1213_s1 = inlined_call_operand.hbm [shape: bf16[32,32], index: 1, kind: input, shape index: {}]   ;;  %s1214_s2 = inlined_call_operand.vmem [shape: f32[1,32], index: 2, kind: input, shape index: {}]   ;;  %s1215_s3 = inlined_call_operand.hbm [shape: bf16[32,128], index: 3, kind: input, shape index: {}]   ;;  %s1216_s4 = inlined_call_operand.vmem [shape: f32[1,128], index: 4, kind: input, shape index: {}]   ;;  %s1217_s5 = inlined_call_operand.hbm [shape: f32[8,128], index: 5, kind: output, shape index: {}]  }
   0x1   :  { %11 = vsyncpa [#allocation6], 0  ;;  %s30_s20 = sshll.u32 %s1213_s1, 4  ;;  %s31_s20 = int_to_ptr.hbm [resolvable:$true] %s30_s20 }
   0x2   :  { %12 = vsyncpa [#allocation4], 0  ;;  %s1061_s21 = smov [#allocation5]   ;;  %s17_s25 = sshll.u32 %s1212_s0, 4  ;;  %s18_s25 = int_to_ptr.hbm [resolvable:$true] %s17_s25 }
   0x3   :  { %s32_s22 = sshll.u32 %s1061_s21, 4  ;;  %s1062_s26 = smov 64   ;;  %s33_s22 = int_to_ptr.vmem [resolvable:$true] %s32_s22 }
   0x4   :  { %s1063_s27 = smov 4   ;;  %s1064_s28 = smov [#allocation2]  }
   0x5   :  { %38 = dma.hbm_to_vmem [thread:$0]  %s31_s20, 256, %s33_s22, [#allocation6], %s1062_s26, %s1062_s26, %s1063_s27  }
   0x6   :  { %s19_s29 = sshll.u32 %s1064_s28, 4  ;;  %s1065_s30 = smov 128   ;;  %s20_s29 = int_to_ptr.vmem [resolvable:$true] %s19_s29 }
   0x7   :  { %s1066_s6 = smov 8   ;;  %s45_s8 = sshll.u32 %s1215_s3, 4  ;;  %s46_s8 = int_to_ptr.hbm [resolvable:$true] %s45_s8 }
   0x8   :  { %25 = dma.hbm_to_vmem [thread:$0]  %s18_s25, 4096, %s20_s29, [#allocation3], %s1065_s30, %s1065_s30, %s1066_s6  }
   0x9   :  { %s1067_s9 = smov [#allocation7]  }
   0xa   :  { %s47_s10 = sshll.u32 %s1067_s9, 4  ;;  %s48_s10 = int_to_ptr.vmem [resolvable:$true] %s47_s10 }
   0xb   :  { %53 = dma.hbm_to_vmem [thread:$0]  %s46_s8, 256, %s48_s10, [#allocation6], %s1062_s26, %s1062_s26, %s1063_s27  }
   0xc   :  { %1055 = dma.done.wait [#allocation3], 4096  }
   0xd   :  { %1056 = vsyncadd [#allocation3], 4294963200 }
   0xe   :  { %1057 = dma.done.wait [#allocation6], 512  }
   0xf   :  { %1058 = vsyncadd [#allocation6], 4294966784  ;;  %v873_v0 = vld [vmem:[#allocation5 + $0x8] sm:$0xff]  ;;  %v74_v1 = vld [vmem:[#allocation2] sm:$0xff]  ;;  %vm238_vm0 = vcmask 261120   ;;  %vm757_vm1 = vcmask 1041409  }
  0x10   :  { %v75_v2 = vld [vmem:[#allocation2 + $0x8] sm:$0xff]  ;;  %v106_v3 = vpack.c.bf16 %v74_v1, %v74_v1  ;;  %v90_v4 = vld [vmem:[#allocation2 + $0x80] sm:$0xff]  ;;  %293 = vmatpush.bf16.msra.mxu0 %v873_v0  ;;  %876 = vmatpush.bf16.msra.mxu2 %v873_v0  ;;  %v76_v16 = vld [vmem:[#allocation2 + $0x10] sm:$0xff]  ;;  %vm759_vm2 = vcmask 1042434   ;;  %vm761_vm3 = vcmask 1043459   ;;  %vm763_vm4 = vcmask 1044484  }
  0x11   :  { %v91_v5 = vld [vmem:[#allocation2 + $0x88] sm:$0xff]  ;;  %v872_v6 = vld [vmem:[#allocation5] sm:$0xff]  ;;  %v107_v7 = vpack.c.bf16 %v75_v2, %v75_v2  ;;  %v122_v8 = vpack.c.bf16 %v90_v4, %v90_v4  ;;  %v77_v17 = vld [vmem:[#allocation2 + $0x18] sm:$0xff]  ;;  %v108_v20 = vpack.c.bf16 %v76_v16, %v76_v16  ;;  %vm765_vm5 = vcmask 1045509   ;;  %s813_s15 = sshll.u32 %s1217_s5, 4  ;;  %s814_s15 = int_to_ptr.hbm [resolvable:$true] %s813_s15 }
  0x12   :  { %v123_v9 = vpack.c.bf16 %v91_v5, %v91_v5  ;;  %v178_v10 = vunpack.c.l.b16 %v106_v3  ;;  %v92_v18 = vld [vmem:[#allocation2 + $0x90] sm:$0xff]  ;;  %v93_v19 = vld [vmem:[#allocation2 + $0x98] sm:$0xff]  ;;  %v109_v21 = vpack.c.bf16 %v77_v17, %v77_v17  ;;  %v78_v30 = vld [vmem:[#allocation2 + $0x20] sm:$0xff]  ;;  %vm767_vm6 = vcmask 1046534  }
  0x13   :  { %v179_v11 = vunpack.c.l.b16 %v107_v7  ;;  %v194_v12 = vunpack.c.l.b16 %v122_v8  ;;  %v124_v22 = vpack.c.bf16 %v92_v18, %v92_v18  ;;  %v125_v23 = vpack.c.bf16 %v93_v19, %v93_v19  ;;  %v79_v31 = vld [vmem:[#allocation2 + $0x28] sm:$0xff]  ;;  %v94_v32 = vld [vmem:[#allocation2 + $0xa0] sm:$0xff]  ;;  %v80_v44 = vld [vmem:[#allocation2 + $0x30] sm:$0xff] }
  0x14   :  { %v195_v13 = vunpack.c.l.b16 %v123_v9  ;;  %294 = vmatpush.bf16.msra.mxu0 %v872_v6  ;;  %877 = vmatpush.bf16.msra.mxu2 %v872_v6  ;;  %v180_v24 = vunpack.c.l.b16 %v108_v20  ;;  %v181_v25 = vunpack.c.l.b16 %v109_v21  ;;  %v95_v33 = vld [vmem:[#allocation2 + $0xa8] sm:$0xff]  ;;  %v110_v34 = vpack.c.bf16 %v78_v30, %v78_v30  ;;  %v81_v45 = vld [vmem:[#allocation2 + $0x38] sm:$0xff]  ;;  %v96_v46 = vld [vmem:[#allocation2 + $0xb0] sm:$0xff] }
  0x15   :  { %v210_v14 = vpack.c.b16 %v179_v11, %v178_v10  ;;  %v196_v26 = vunpack.c.l.b16 %v124_v22  ;;  %v197_v27 = vunpack.c.l.b16 %v125_v23  ;;  %v111_v35 = vpack.c.bf16 %v79_v31, %v79_v31  ;;  %v97_v47 = vld [vmem:[#allocation2 + $0xb8] sm:$0xff]  ;;  %v82_v58 = vld [vmem:[#allocation2 + $0x40] sm:$0xff]  ;;  %v83_v59 = vld [vmem:[#allocation2 + $0x48] sm:$0xff] }
  0x16   :  { %v218_v15 = vpack.c.b16 %v195_v13, %v194_v12  ;;  %v211_v28 = vpack.c.b16 %v181_v25, %v180_v24  ;;  %v126_v36 = vpack.c.bf16 %v94_v32, %v94_v32  ;;  %v127_v37 = vpack.c.bf16 %v95_v33, %v95_v33  ;;  %v98_v60 = vld [vmem:[#allocation2 + $0xc0] sm:$0xff]  ;;  %v99_v61 = vld [vmem:[#allocation2 + $0xc8] sm:$0xff]  ;;  %v84_v8 = vld [vmem:[#allocation2 + $0x50] sm:$0xff] }
  0x17   :  { %832 = vmatmul.msk.bf16.vlgmr.msra.gmra.mxu0 %vm238_vm0, %v210_v14  ;;  %v219_v29 = vpack.c.b16 %v197_v27, %v196_v26  ;;  %v182_v38 = vunpack.c.l.b16 %v110_v34  ;;  %v183_v39 = vunpack.c.l.b16 %v111_v35  ;;  %v112_v48 = vpack.c.bf16 %v80_v44, %v80_v44  ;;  %v85_v9 = vld [vmem:[#allocation2 + $0x58] sm:$0xff]  ;;  %v100_v10 = vld [vmem:[#allocation2 + $0xd0] sm:$0xff]  ;;  %v86_v22 = vld [vmem:[#allocation2 + $0x60] sm:$0xff] }
  0x18   :  { %840 = vmatmul.msk.bf16.vlgmr.msra.gmra.mxu2 %vm238_vm0, %v218_v15  ;;  %v198_v40 = vunpack.c.l.b16 %v126_v36  ;;  %v199_v41 = vunpack.c.l.b16 %v127_v37  ;;  %v113_v49 = vpack.c.bf16 %v81_v45, %v81_v45  ;;  %v128_v50 = vpack.c.bf16 %v96_v46, %v96_v46  ;;  %v101_v11 = vld [vmem:[#allocation2 + $0xd8] sm:$0xff]  ;;  %v87_v23 = vld [vmem:[#allocation2 + $0x68] sm:$0xff]  ;;  %v102_v24 = vld [vmem:[#allocation2 + $0xe0] sm:$0xff] }
  0x19   :  { %v212_v42 = vpack.c.b16 %v183_v39, %v182_v38  ;;  %v129_v51 = vpack.c.bf16 %v97_v47, %v97_v47  ;;  %v184_v52 = vunpack.c.l.b16 %v112_v48  ;;  %v114_v62 = vpack.c.bf16 %v82_v58, %v82_v58  ;;  %v103_v25 = vld [vmem:[#allocation2 + $0xe8] sm:$0xff]  ;;  %v88_v36 = vld [vmem:[#allocation2 + $0x70] sm:$0xff]  ;;  %v89_v37 = vld [vmem:[#allocation2 + $0x78] sm:$0xff] }
  0x1a   :  { %v220_v43 = vpack.c.b16 %v199_v41, %v198_v40  ;;  %v185_v53 = vunpack.c.l.b16 %v113_v49  ;;  %v200_v54 = vunpack.c.l.b16 %v128_v50  ;;  %v115_v63 = vpack.c.bf16 %v83_v59, %v83_v59  ;;  %v104_v38 = vld [vmem:[#allocation2 + $0xf0] sm:$0xff]  ;;  %v105_v39 = vld [vmem:[#allocation2 + $0xf8] sm:$0xff] }
  0x1b   :  { %v201_v55 = vunpack.c.l.b16 %v129_v51  ;;  %v130_v0 = vpack.c.bf16 %v98_v60, %v98_v60  ;;  %v131_v1 = vpack.c.bf16 %v99_v61, %v99_v61  ;;  %v186_v2 = vunpack.c.l.b16 %v114_v62  ;;  %v875_v50 = vld [vmem:[#allocation7 + $0x8] sm:$0xff]  ;;  %v874_v51 = vld [vmem:[#allocation7] sm:$0xff] }
  0x1c   :  { %v213_v56 = vpack.c.b16 %v185_v53, %v184_v52  ;;  %v187_v3 = vunpack.c.l.b16 %v115_v63  ;;  %v116_v12 = vpack.c.bf16 %v84_v8, %v84_v8  ;;  %v117_v13 = vpack.c.bf16 %v85_v9, %v85_v9  ;;  %546 = vmatpush.bf16.msra.mxu1 %v875_v50  ;;  %878 = vmatpush.bf16.msra.mxu3 %v875_v50  ;;  %v1127_v53 = vld [vmem:[%s1214_s2] ss:$0 sm:$0xff] }
  0x1d   :  { %v221_v57 = vpack.c.b16 %v201_v55, %v200_v54  ;;  %v202_v4 = vunpack.c.l.b16 %v130_v0  ;;  %v203_v5 = vunpack.c.l.b16 %v131_v1  ;;  %v132_v14 = vpack.c.bf16 %v100_v10, %v100_v10 }
  0x1e   :  { %v214_v6 = vpack.c.b16 %v187_v3, %v186_v2  ;;  %v133_v15 = vpack.c.bf16 %v101_v11, %v101_v11  ;;  %v188_v16 = vunpack.c.l.b16 %v116_v12  ;;  %v189_v17 = vunpack.c.l.b16 %v117_v13 }
  0x1f   :  { %v222_v7 = vpack.c.b16 %v203_v5, %v202_v4  ;;  %v204_v18 = vunpack.c.l.b16 %v132_v14  ;;  %v118_v26 = vpack.c.bf16 %v86_v22, %v86_v22  ;;  %v119_v27 = vpack.c.bf16 %v87_v23, %v87_v23 }
  0x20   :  { %v205_v19 = vunpack.c.l.b16 %v133_v15  ;;  %v215_v20 = vpack.c.b16 %v189_v17, %v188_v16  ;;  %v120_v40 = vpack.c.bf16 %v88_v36, %v88_v36  ;;  %v121_v41 = vpack.c.bf16 %v89_v37, %v89_v37  ;;  %547 = vmatpush.bf16.msra.mxu1 %v874_v51  ;;  %879 = vmatpush.bf16.msra.mxu3 %v874_v51 }
  0x21   :  { %v190_v30 = vunpack.c.l.b16 %v118_v26  ;;  %v191_v31 = vunpack.c.l.b16 %v119_v27  ;;  %vm769_vm7 = vcmask 1047559  }
  0x22   :  { %v223_v21 = vpack.c.b16 %v205_v19, %v204_v18  ;;  %v192_v44 = vunpack.c.l.b16 %v120_v40  ;;  %v193_v45 = vunpack.c.l.b16 %v121_v41 }
  0x23   :  { %v216_v34 = vpack.c.b16 %v191_v31, %v190_v30 }
  0x24   :  { %v217_v48 = vpack.c.b16 %v193_v45, %v192_v44 }
  0x27   :  { %833 = vmatmul.msk.bf16.gmra.mxu0 %vm238_vm0, %v211_v28  ;;  %v134_v28 = vpack.c.bf16 %v102_v24, %v102_v24 }
  0x28   :  { %841 = vmatmul.msk.bf16.gmra.mxu2 %vm238_vm0, %v219_v29  ;;  %v135_v29 = vpack.c.bf16 %v103_v25, %v103_v25 }
  0x29   :  { %v206_v32 = vunpack.c.l.b16 %v134_v28 }
  0x2a   :  { %v207_v33 = vunpack.c.l.b16 %v135_v29 }
  0x2c   :  { %v224_v35 = vpack.c.b16 %v207_v33, %v206_v32 }
  0x37   :  { %834 = vmatmul.msk.bf16.gmra.mxu0 %vm238_vm0, %v212_v42  ;;  %v136_v42 = vpack.c.bf16 %v104_v38, %v104_v38 }
  0x38   :  { %842 = vmatmul.msk.bf16.gmra.mxu2 %vm238_vm0, %v220_v43  ;;  %v137_v43 = vpack.c.bf16 %v105_v39, %v105_v39 }
  0x39   :  { %v208_v46 = vunpack.c.l.b16 %v136_v42 }
  0x3a   :  { %v209_v47 = vunpack.c.l.b16 %v137_v43 }
  0x3c   :  { %v225_v49 = vpack.c.b16 %v209_v47, %v208_v46 }
  0x47   :  { %835 = vmatmul.msk.bf16.gmra.mxu0 %vm238_vm0, %v213_v56 }
  0x48   :  { %843 = vmatmul.msk.bf16.gmra.mxu2 %vm238_vm0, %v221_v57 }
  0x57   :  { %836 = vmatmul.msk.bf16.gmra.mxu0 %vm238_vm0, %v214_v6 }
  0x58   :  { %844 = vmatmul.msk.bf16.gmra.mxu2 %vm238_vm0, %v222_v7 }
  0x67   :  { %837 = vmatmul.msk.bf16.gmra.mxu0 %vm238_vm0, %v215_v20 }
  0x68   :  { %845 = vmatmul.msk.bf16.gmra.mxu2 %vm238_vm0, %v223_v21 }
  0x77   :  { %838 = vmatmul.msk.bf16.gmra.mxu0 %vm238_vm0, %v216_v34 }
  0x78   :  { %846 = vmatmul.msk.bf16.gmra.mxu2 %vm238_vm0, %v224_v35 }
  0x87   :  { %839 = vmatmul.msk.bf16.gmra.mxu0 %vm238_vm0, %v217_v48 }
  0x88   :  { %847 = vmatmul.msk.bf16.gmra.mxu2 %vm238_vm0, %v225_v49 }
  0x94   :  { %v296_v52 = vpop.f32.mrf.mxu0 }
  0x95   :  { %v297_v55 = vadd.f32 %v1127_v53, %v296_v52 }
  0x9b   :  { %v336_v54 = vpop.f32.mrf.mxu2 }
  0x9c   :  { %v298_v56 = vpop.f32.mrf.mxu0  ;;  %v337_v62 = vadd.f32 %v1127_v53, %v336_v54 }
  0x9d   :  { %v299_v57 = vadd.f32 %v1127_v53, %v298_v56 }
  0x9f   :  { %v376_v58 = vpack.c.bf16 %v299_v57, %v297_v55 }
  0xa1   :  { %v392_v59 = vunpack.c.l.bf16 %v376_v58  ;;  %v393_v60 = vunpack.c.h.bf16 %v376_v58 }
  0xa3   :  { %v338_v61 = vpop.f32.mrf.mxu2  ;;  %891 = vtanh.f32 %v392_v59 }
  0xa4   :  { %v339_v63 = vadd.f32 %v1127_v53, %v338_v61  ;;  %893 = vtanh.f32 %v393_v60  ;;  %v301_v0 = vpop.f32.mrf.mxu0 }
  0xa5   :  { %v302_v7 = vadd.f32 %v1127_v53, %v301_v0 }
  0xa6   :  { %v384_v1 = vpack.c.bf16 %v339_v63, %v337_v62 }
  0xa8   :  { %v408_v2 = vunpack.c.l.bf16 %v384_v1  ;;  %v409_v3 = vunpack.c.h.bf16 %v384_v1 }
  0xa9   :  { %v892_v4 = vpop.eup %891 }
  0xaa   :  { %895 = vtanh.f32 %v408_v2  ;;  %v894_v5 = vpop.eup %893 }
  0xab   :  { %897 = vtanh.f32 %v409_v3  ;;  %v341_v6 = vpop.f32.mrf.mxu2  ;;  %v456_v8 = vpack.c.bf16 %v894_v5, %v892_v4 }
  0xac   :  { %v303_v9 = vpop.f32.mrf.mxu0  ;;  %v342_v18 = vadd.f32 %v1127_v53, %v341_v6 }
  0xad   :  { %v304_v10 = vadd.f32 %v1127_v53, %v303_v9  ;;  %856 = vmatmul.msk.bf16.vlgmr.msra.gmra.mxu1 %vm238_vm0, %v456_v8 }
  0xaf   :  { %v377_v12 = vpack.c.bf16 %v304_v10, %v302_v7 }
  0xb0   :  { %v896_v11 = vpop.eup %895 }
  0xb1   :  { %v898_v13 = vpop.eup %897  ;;  %v394_v14 = vunpack.c.l.bf16 %v377_v12  ;;  %v395_v15 = vunpack.c.h.bf16 %v377_v12 }
  0xb2   :  { %v464_v16 = vpack.c.bf16 %v898_v13, %v896_v11 }
  0xb3   :  { %v343_v17 = vpop.f32.mrf.mxu2  ;;  %899 = vtanh.f32 %v394_v14 }
  0xb4   :  { %v344_v19 = vadd.f32 %v1127_v53, %v343_v17  ;;  %864 = vmatmul.msk.bf16.vlgmr.msra.gmra.mxu3 %vm238_vm0, %v464_v16  ;;  %901 = vtanh.f32 %v395_v15  ;;  %v306_v20 = vpop.f32.mrf.mxu0 }
  0xb5   :  { %v307_v27 = vadd.f32 %v1127_v53, %v306_v20 }
  0xb6   :  { %v385_v21 = vpack.c.bf16 %v344_v19, %v342_v18 }
  0xb8   :  { %v410_v22 = vunpack.c.l.bf16 %v385_v21  ;;  %v411_v23 = vunpack.c.h.bf16 %v385_v21 }
  0xb9   :  { %v900_v24 = vpop.eup %899 }
  0xba   :  { %903 = vtanh.f32 %v410_v22  ;;  %v902_v25 = vpop.eup %901 }
  0xbb   :  { %905 = vtanh.f32 %v411_v23  ;;  %v346_v26 = vpop.f32.mrf.mxu2  ;;  %v457_v28 = vpack.c.bf16 %v902_v25, %v900_v24 }
  0xbc   :  { %v308_v29 = vpop.f32.mrf.mxu0  ;;  %v347_v38 = vadd.f32 %v1127_v53, %v346_v26 }
  0xbd   :  { %v309_v30 = vadd.f32 %v1127_v53, %v308_v29  ;;  %857 = vmatmul.msk.bf16.gmra.mxu1 %vm238_vm0, %v457_v28 }
  0xbf   :  { %v378_v32 = vpack.c.bf16 %v309_v30, %v307_v27 }
  0xc0   :  { %v904_v31 = vpop.eup %903 }
  0xc1   :  { %v906_v33 = vpop.eup %905  ;;  %v396_v34 = vunpack.c.l.bf16 %v378_v32  ;;  %v397_v35 = vunpack.c.h.bf16 %v378_v32 }
  0xc2   :  { %v465_v36 = vpack.c.bf16 %v906_v33, %v904_v31 }
  0xc3   :  { %v348_v37 = vpop.f32.mrf.mxu2  ;;  %907 = vtanh.f32 %v396_v34 }
  0xc4   :  { %v349_v39 = vadd.f32 %v1127_v53, %v348_v37  ;;  %865 = vmatmul.msk.bf16.gmra.mxu3 %vm238_vm0, %v465_v36  ;;  %909 = vtanh.f32 %v397_v35  ;;  %v311_v40 = vpop.f32.mrf.mxu0 }
  0xc5   :  { %v312_v47 = vadd.f32 %v1127_v53, %v311_v40 }
  0xc6   :  { %v386_v41 = vpack.c.bf16 %v349_v39, %v347_v38 }
  0xc8   :  { %v412_v42 = vunpack.c.l.bf16 %v386_v41  ;;  %v413_v43 = vunpack.c.h.bf16 %v386_v41 }
  0xc9   :  { %v908_v44 = vpop.eup %907 }
  0xca   :  { %911 = vtanh.f32 %v412_v42  ;;  %v910_v45 = vpop.eup %909 }
  0xcb   :  { %913 = vtanh.f32 %v413_v43  ;;  %v351_v46 = vpop.f32.mrf.mxu2  ;;  %v458_v48 = vpack.c.bf16 %v910_v45, %v908_v44 }
  0xcc   :  { %v313_v49 = vpop.f32.mrf.mxu0  ;;  %v352_v59 = vadd.f32 %v1127_v53, %v351_v46 }
  0xcd   :  { %v314_v50 = vadd.f32 %v1127_v53, %v313_v49  ;;  %858 = vmatmul.msk.bf16.gmra.mxu1 %vm238_vm0, %v458_v48 }
  0xcf   :  { %v379_v52 = vpack.c.bf16 %v314_v50, %v312_v47 }
  0xd0   :  { %v912_v51 = vpop.eup %911 }
  0xd1   :  { %v914_v54 = vpop.eup %913  ;;  %v398_v55 = vunpack.c.l.bf16 %v379_v52  ;;  %v399_v56 = vunpack.c.h.bf16 %v379_v52 }
  0xd2   :  { %v466_v57 = vpack.c.bf16 %v914_v54, %v912_v51 }
  0xd3   :  { %v353_v58 = vpop.f32.mrf.mxu2  ;;  %915 = vtanh.f32 %v398_v55 }
  0xd4   :  { %v354_v60 = vadd.f32 %v1127_v53, %v353_v58  ;;  %866 = vmatmul.msk.bf16.gmra.mxu3 %vm238_vm0, %v466_v57  ;;  %917 = vtanh.f32 %v399_v56  ;;  %v316_v61 = vpop.f32.mrf.mxu0 }
  0xd5   :  { %v317_v4 = vadd.f32 %v1127_v53, %v316_v61 }
  0xd6   :  { %v387_v62 = vpack.c.bf16 %v354_v60, %v352_v59 }
  0xd8   :  { %v414_v63 = vunpack.c.l.bf16 %v387_v62  ;;  %v415_v0 = vunpack.c.h.bf16 %v387_v62 }
  0xd9   :  { %v916_v1 = vpop.eup %915 }
  0xda   :  { %919 = vtanh.f32 %v414_v63  ;;  %v918_v2 = vpop.eup %917 }
  0xdb   :  { %921 = vtanh.f32 %v415_v0  ;;  %v356_v3 = vpop.f32.mrf.mxu2  ;;  %v459_v5 = vpack.c.bf16 %v918_v2, %v916_v1 }
  0xdc   :  { %v318_v6 = vpop.f32.mrf.mxu0  ;;  %v357_v15 = vadd.f32 %v1127_v53, %v356_v3 }
  0xdd   :  { %v319_v7 = vadd.f32 %v1127_v53, %v318_v6  ;;  %859 = vmatmul.msk.bf16.gmra.mxu1 %vm238_vm0, %v459_v5 }
  0xdf   :  { %v380_v9 = vpack.c.bf16 %v319_v7, %v317_v4 }
  0xe0   :  { %v920_v8 = vpop.eup %919 }
  0xe1   :  { %v922_v10 = vpop.eup %921  ;;  %v400_v11 = vunpack.c.l.bf16 %v380_v9  ;;  %v401_v12 = vunpack.c.h.bf16 %v380_v9 }
  0xe2   :  { %v467_v13 = vpack.c.bf16 %v922_v10, %v920_v8 }
  0xe3   :  { %v358_v14 = vpop.f32.mrf.mxu2  ;;  %923 = vtanh.f32 %v400_v11 }
  0xe4   :  { %v359_v16 = vadd.f32 %v1127_v53, %v358_v14  ;;  %867 = vmatmul.msk.bf16.gmra.mxu3 %vm238_vm0, %v467_v13  ;;  %925 = vtanh.f32 %v401_v12  ;;  %v321_v17 = vpop.f32.mrf.mxu0 }
  0xe5   :  { %v322_v24 = vadd.f32 %v1127_v53, %v321_v17 }
  0xe6   :  { %v388_v18 = vpack.c.bf16 %v359_v16, %v357_v15 }
  0xe8   :  { %v416_v19 = vunpack.c.l.bf16 %v388_v18  ;;  %v417_v20 = vunpack.c.h.bf16 %v388_v18 }
  0xe9   :  { %v924_v21 = vpop.eup %923 }
  0xea   :  { %927 = vtanh.f32 %v416_v19  ;;  %v926_v22 = vpop.eup %925 }
  0xeb   :  { %929 = vtanh.f32 %v417_v20  ;;  %v361_v23 = vpop.f32.mrf.mxu2  ;;  %v460_v25 = vpack.c.bf16 %v926_v22, %v924_v21 }
  0xec   :  { %v323_v26 = vpop.f32.mrf.mxu0  ;;  %v362_v35 = vadd.f32 %v1127_v53, %v361_v23 }
  0xed   :  { %v324_v27 = vadd.f32 %v1127_v53, %v323_v26  ;;  %860 = vmatmul.msk.bf16.gmra.mxu1 %vm238_vm0, %v460_v25 }
  0xef   :  { %v381_v29 = vpack.c.bf16 %v324_v27, %v322_v24 }
  0xf0   :  { %v928_v28 = vpop.eup %927 }
  0xf1   :  { %v930_v30 = vpop.eup %929  ;;  %v402_v31 = vunpack.c.l.bf16 %v381_v29  ;;  %v403_v32 = vunpack.c.h.bf16 %v381_v29 }
  0xf2   :  { %v468_v33 = vpack.c.bf16 %v930_v30, %v928_v28 }
  0xf3   :  { %v363_v34 = vpop.f32.mrf.mxu2  ;;  %931 = vtanh.f32 %v402_v31 }
  0xf4   :  { %v364_v36 = vadd.f32 %v1127_v53, %v363_v34  ;;  %868 = vmatmul.msk.bf16.gmra.mxu3 %vm238_vm0, %v468_v33  ;;  %933 = vtanh.f32 %v403_v32  ;;  %v326_v37 = vpop.f32.mrf.mxu0 }
  0xf5   :  { %v327_v44 = vadd.f32 %v1127_v53, %v326_v37 }
  0xf6   :  { %v389_v38 = vpack.c.bf16 %v364_v36, %v362_v35 }
  0xf8   :  { %v418_v39 = vunpack.c.l.bf16 %v389_v38  ;;  %v419_v40 = vunpack.c.h.bf16 %v389_v38 }
  0xf9   :  { %v932_v41 = vpop.eup %931 }
  0xfa   :  { %935 = vtanh.f32 %v418_v39  ;;  %v934_v42 = vpop.eup %933 }
  0xfb   :  { %937 = vtanh.f32 %v419_v40  ;;  %v366_v43 = vpop.f32.mrf.mxu2  ;;  %v461_v45 = vpack.c.bf16 %v934_v42, %v932_v41 }
  0xfc   :  { %v328_v46 = vpop.f32.mrf.mxu0  ;;  %v367_v56 = vadd.f32 %v1127_v53, %v366_v43 }
  0xfd   :  { %v329_v47 = vadd.f32 %v1127_v53, %v328_v46  ;;  %861 = vmatmul.msk.bf16.gmra.mxu1 %vm238_vm0, %v461_v45 }
  0xff   :  { %v382_v49 = vpack.c.bf16 %v329_v47, %v327_v44 }
 0x100   :  { %v936_v48 = vpop.eup %935 }
 0x101   :  { %v938_v50 = vpop.eup %937  ;;  %v404_v51 = vunpack.c.l.bf16 %v382_v49  ;;  %v405_v52 = vunpack.c.h.bf16 %v382_v49 }
 0x102   :  { %v469_v54 = vpack.c.bf16 %v938_v50, %v936_v48 }
 0x103   :  { %v368_v55 = vpop.f32.mrf.mxu2  ;;  %939 = vtanh.f32 %v404_v51 }
 0x104   :  { %v369_v57 = vadd.f32 %v1127_v53, %v368_v55  ;;  %869 = vmatmul.msk.bf16.gmra.mxu3 %vm238_vm0, %v469_v54  ;;  %941 = vtanh.f32 %v405_v52  ;;  %v331_v58 = vpop.f32.mrf.mxu0 }
 0x105   :  { %v332_v1 = vadd.f32 %v1127_v53, %v331_v58 }
 0x106   :  { %v390_v59 = vpack.c.bf16 %v369_v57, %v367_v56 }
 0x108   :  { %v420_v60 = vunpack.c.l.bf16 %v390_v59  ;;  %v421_v61 = vunpack.c.h.bf16 %v390_v59 }
 0x109   :  { %v940_v62 = vpop.eup %939 }
 0x10a   :  { %943 = vtanh.f32 %v420_v60  ;;  %v942_v63 = vpop.eup %941 }
 0x10b   :  { %945 = vtanh.f32 %v421_v61  ;;  %v371_v0 = vpop.f32.mrf.mxu2  ;;  %v462_v2 = vpack.c.bf16 %v942_v63, %v940_v62 }
 0x10c   :  { %v333_v3 = vpop.f32.mrf.mxu0  ;;  %v372_v12 = vadd.f32 %v1127_v53, %v371_v0 }
 0x10d   :  { %v334_v4 = vadd.f32 %v1127_v53, %v333_v3  ;;  %862 = vmatmul.msk.bf16.gmra.mxu1 %vm238_vm0, %v462_v2 }
 0x10f   :  { %v383_v6 = vpack.c.bf16 %v334_v4, %v332_v1 }
 0x110   :  { %v944_v5 = vpop.eup %943 }
 0x111   :  { %v946_v7 = vpop.eup %945  ;;  %v406_v8 = vunpack.c.l.bf16 %v383_v6  ;;  %v407_v9 = vunpack.c.h.bf16 %v383_v6 }
 0x112   :  { %v470_v10 = vpack.c.bf16 %v946_v7, %v944_v5 }
 0x113   :  { %v373_v11 = vpop.f32.mrf.mxu2  ;;  %947 = vtanh.f32 %v406_v8 }
 0x114   :  { %v374_v13 = vadd.f32 %v1127_v53, %v373_v11  ;;  %870 = vmatmul.msk.bf16.gmra.mxu3 %vm238_vm0, %v470_v10  ;;  %949 = vtanh.f32 %v407_v9  ;;  %v1180_v53 = vld [vmem:[%s1216_s4] ss:$0 sm:$0xff]  ;;  %s1068_s4 = smov [#allocation8]  }
 0x115   :  { %s811_s12 = sshll.u32 %s1068_s4, 4  ;;  %s812_s12 = int_to_ptr.vmem [resolvable:$true] %s811_s12 }
 0x116   :  { %v391_v14 = vpack.c.bf16 %v374_v13, %v372_v12 }
 0x118   :  { %v422_v15 = vunpack.c.l.bf16 %v391_v14  ;;  %v423_v16 = vunpack.c.h.bf16 %v391_v14 }
 0x119   :  { %v948_v17 = vpop.eup %947 }
 0x11a   :  { %951 = vtanh.f32 %v422_v15  ;;  %v950_v18 = vpop.eup %949 }
 0x11b   :  { %953 = vtanh.f32 %v423_v16  ;;  %v463_v19 = vpack.c.bf16 %v950_v18, %v948_v17 }
 0x11d   :  { %863 = vmatmul.msk.bf16.gmra.mxu1 %vm238_vm0, %v463_v19 }
 0x120   :  { %v952_v20 = vpop.eup %951 }
 0x121   :  { %v954_v21 = vpop.eup %953 }
 0x122   :  { %v471_v22 = vpack.c.bf16 %v954_v21, %v952_v20 }
 0x124   :  { %871 = vmatmul.msk.bf16.gmra.mxu3 %vm238_vm0, %v471_v22 }
 0x12a   :  { %v549_v23 = vpop.f32.mrf.mxu1 }
 0x12b   :  { %v550_v25 = vadd.f32 %v1180_v53, %v549_v23 }
 0x132   :  { %v551_v24 = vpop.f32.mrf.mxu1 }
 0x133   :  { %v552_v26 = vadd.f32 %v1180_v53, %v551_v24 }
 0x135   :  { %v677_v27 = vmax.f32 %v550_v25, %v552_v26 }
 0x137   :  { %v589_v28 = vpop.f32.mrf.mxu3 }
 0x138   :  { %v590_v33 = vadd.f32 %v1180_v53, %v589_v28 }
 0x13a   :  { %v554_v29 = vpop.f32.mrf.mxu1 }
 0x13b   :  { %v555_v30 = vadd.f32 %v1180_v53, %v554_v29 }
 0x13d   :  { %v678_v31 = vmax.f32 %v677_v27, %v555_v30 }
 0x13f   :  { %v591_v32 = vpop.f32.mrf.mxu3  ;;  %v680_v45 = vrot.slane %v678_v31, 4 }
 0x140   :  { %v592_v34 = vadd.f32 %v1180_v53, %v591_v32 }
 0x141   :  { %v681_v48 = vmax.f32 %v678_v31, %v680_v45 }
 0x142   :  { %v713_v35 = vmax.f32 %v590_v33, %v592_v34  ;;  %v556_v36 = vpop.f32.mrf.mxu1 }
 0x143   :  { %v682_v51 = vrot.slane %v681_v48, 2 }
 0x145   :  { %v683_v58 = vmax.f32 %v681_v48, %v682_v51 }
 0x147   :  { %v594_v37 = vpop.f32.mrf.mxu3  ;;  %v684_v63 = vrot.slane %v683_v58, 1 }
 0x148   :  { %v595_v38 = vadd.f32 %v1180_v53, %v594_v37 }
 0x149   :  { %v685_v3 = vmax.f32 %v683_v58, %v684_v63 }
 0x14a   :  { %v714_v39 = vmax.f32 %v713_v35, %v595_v38  ;;  %v559_v40 = vpop.f32.mrf.mxu1 }
 0x14b   :  { %v560_v43 = vadd.f32 %v1180_v53, %v559_v40 }
 0x14c   :  { %v716_v25 = vrot.slane %v714_v39, 4 }
 0x14e   :  { %v717_v34 = vmax.f32 %v714_v39, %v716_v25 }
 0x14f   :  { %v596_v41 = vpop.f32.mrf.mxu3 }
 0x152   :  { %v561_v42 = vpop.f32.mrf.mxu1 }
 0x153   :  { %v562_v44 = vadd.f32 %v1180_v53, %v561_v42 }
 0x155   :  { %v686_v46 = vmax.f32 %v560_v43, %v562_v44  ;;  %v718_v44 = vrot.slane %v717_v34, 2 }
 0x157   :  { %v599_v47 = vpop.f32.mrf.mxu3  ;;  %v719_v51 = vmax.f32 %v717_v34, %v718_v44 }
 0x158   :  { %v600_v55 = vadd.f32 %v1180_v53, %v599_v47 }
 0x15a   :  { %v564_v49 = vpop.f32.mrf.mxu1 }
 0x15b   :  { %v565_v50 = vadd.f32 %v1180_v53, %v564_v49 }
 0x15d   :  { %v687_v52 = vmax.f32 %v686_v46, %v565_v50 }
 0x15f   :  { %v601_v54 = vpop.f32.mrf.mxu3  ;;  %v689_v56 = vrot.slane %v687_v52, 4 }
 0x160   :  { %v602_v57 = vadd.f32 %v1180_v53, %v601_v54 }
 0x161   :  { %v690_v59 = vmax.f32 %v687_v52, %v689_v56 }
 0x162   :  { %v722_v60 = vmax.f32 %v600_v55, %v602_v57  ;;  %v566_v61 = vpop.f32.mrf.mxu1 }
 0x163   :  { %v691_v62 = vrot.slane %v690_v59, 2 }
 0x165   :  { %v692_v0 = vmax.f32 %v690_v59, %v691_v62 }
 0x167   :  { %v604_v1 = vpop.f32.mrf.mxu3  ;;  %v693_v2 = vrot.slane %v692_v0, 1 }
 0x168   :  { %v605_v21 = vadd.f32 %v1180_v53, %v604_v1 }
 0x169   :  { %v694_v4 = vmax.f32 %v692_v0, %v693_v2 }
 0x16a   :  { %v569_v5 = vpop.f32.mrf.mxu1  ;;  %v723_v24 = vmax.f32 %v722_v60, %v605_v21  ;;  %v720_v60 = vrot.slane %v719_v51, 1 }
 0x16b   :  { %v1193_v6 = vsel %vm757_vm1, %v694_v4, %v685_v3  ;;  %v570_v15 = vadd.f32 %v1180_v53, %v569_v5 }
 0x16c   :  { %v725_v29 = vrot.slane %v723_v24, 4 }
 0x16e   :  { %v726_v38 = vmax.f32 %v723_v24, %v725_v29 }
 0x16f   :  { %v606_v7 = vpop.f32.mrf.mxu3 }
 0x170   :  { %v727_v47 = vrot.slane %v726_v38, 2  ;;  %v721_v7 = vmax.f32 %v719_v51, %v720_v60 }
 0x172   :  { %v571_v8 = vpop.f32.mrf.mxu1  ;;  %v728_v39 = vmax.f32 %v726_v38, %v727_v47 }
 0x173   :  { %v572_v14 = vadd.f32 %v1180_v53, %v571_v8 }
 0x174   :  { %v729_v63 = vrot.slane %v728_v39, 1 }
 0x175   :  { %v695_v18 = vmax.f32 %v570_v15, %v572_v14 }
 0x177   :  { %v609_v9 = vpop.f32.mrf.mxu3 }
 0x178   :  { %v610_v31 = vadd.f32 %v1180_v53, %v609_v9  ;;  %v730_v9 = vmax.f32 %v728_v39, %v729_v63 }
 0x17a   :  { %v574_v10 = vpop.f32.mrf.mxu1 }
 0x17b   :  { %v575_v16 = vadd.f32 %v1180_v53, %v574_v10 }
 0x17d   :  { %v696_v19 = vmax.f32 %v695_v18, %v575_v16  ;;  %v778_v18 = vlaneseq }
 0x17f   :  { %v611_v11 = vpop.f32.mrf.mxu3  ;;  %v698_v22 = vrot.slane %v696_v19, 4  ;;  %v779_v21 = vand.u32 127, %v778_v18 }
 0x180   :  { %v612_v27 = vadd.f32 %v1180_v53, %v611_v11 }
 0x181   :  { %v699_v26 = vmax.f32 %v696_v19, %v698_v22  ;;  %vm780_vm8 = vcmp.lt.s32.totalorder %v779_v21, 2 }
 0x182   :  { %v576_v12 = vpop.f32.mrf.mxu1  ;;  %v731_v36 = vmax.f32 %v610_v31, %v612_v27 }
 0x183   :  { %v700_v35 = vrot.slane %v699_v26, 2 }
 0x185   :  { %v701_v45 = vmax.f32 %v699_v26, %v700_v35 }
 0x187   :  { %v614_v13 = vpop.f32.mrf.mxu3  ;;  %v702_v52 = vrot.slane %v701_v45, 1 }
 0x188   :  { %v615_v32 = vadd.f32 %v1180_v53, %v614_v13 }
 0x189   :  { %v703_v61 = vmax.f32 %v701_v45, %v702_v52 }
 0x18a   :  { %v579_v17 = vpop.f32.mrf.mxu1  ;;  %v732_v42 = vmax.f32 %v731_v36, %v615_v32 }
 0x18b   :  { %v580_v33 = vadd.f32 %v1180_v53, %v579_v17  ;;  %v760_v8 = vsel %vm759_vm2, %v703_v61, %v1193_v6 }
 0x18c   :  { %v734_v49 = vrot.slane %v732_v42, 4 }
 0x18e   :  { %v735_v57 = vmax.f32 %v732_v42, %v734_v49 }
 0x18f   :  { %v616_v20 = vpop.f32.mrf.mxu3 }
 0x190   :  { %v736_v3 = vrot.slane %v735_v57, 2 }
 0x192   :  { %v581_v23 = vpop.f32.mrf.mxu1  ;;  %v737_v12 = vmax.f32 %v735_v57, %v736_v3 }
 0x193   :  { %v582_v30 = vadd.f32 %v1180_v53, %v581_v23 }
 0x195   :  { %v704_v40 = vmax.f32 %v580_v33, %v582_v30 }
 0x197   :  { %v619_v28 = vpop.f32.mrf.mxu3 }
 0x198   :  { %v620_v58 = vadd.f32 %v1180_v53, %v619_v28 }
 0x19a   :  { %v584_v37 = vpop.f32.mrf.mxu1 }
 0x19b   :  { %v585_v41 = vadd.f32 %v1180_v53, %v584_v37 }
 0x19d   :  { %v705_v43 = vmax.f32 %v704_v40, %v585_v41 }
 0x19f   :  { %v621_v46 = vpop.f32.mrf.mxu3  ;;  %v707_v48 = vrot.slane %v705_v43, 4 }
 0x1a0   :  { %v622_v56 = vadd.f32 %v1180_v53, %v621_v46 }
 0x1a1   :  { %v708_v50 = vmax.f32 %v705_v43, %v707_v48 }
 0x1a2   :  { %v586_v54 = vpop.f32.mrf.mxu1  ;;  %v740_v1 = vmax.f32 %v620_v58, %v622_v56 }
 0x1a3   :  { %v709_v55 = vrot.slane %v708_v50, 2 }
 0x1a5   :  { %v710_v59 = vmax.f32 %v708_v50, %v709_v55 }
 0x1a7   :  { %v624_v62 = vpop.f32.mrf.mxu3  ;;  %v711_v0 = vrot.slane %v710_v59, 1 }
 0x1a8   :  { %v625_v2 = vadd.f32 %v1180_v53, %v624_v62  ;;  %v738_v53 = vrot.slane %v737_v12, 1 }
 0x1a9   :  { %v712_v4 = vmax.f32 %v710_v59, %v711_v0 }
 0x1aa   :  { %v741_v5 = vmax.f32 %v740_v1, %v625_v2  ;;  %v739_v22 = vmax.f32 %v737_v12, %v738_v53 }
 0x1ab   :  { %v762_v10 = vsel %vm761_vm3, %v712_v4, %v760_v8 }
 0x1ac   :  { %v743_v11 = vrot.slane %v741_v5, 4  ;;  %v764_v13 = vsel %vm763_vm4, %v721_v7, %v762_v10 }
 0x1ad   :  { %v766_v15 = vsel %vm765_vm5, %v730_v9, %v764_v13 }
 0x1ae   :  { %v744_v14 = vmax.f32 %v741_v5, %v743_v11  ;;  %v768_v6 = vsel %vm767_vm6, %v739_v22, %v766_v15 }
 0x1af   :  { %v626_v16 = vpop.f32.mrf.mxu3 }
 0x1b0   :  { %v745_v17 = vrot.slane %v744_v14, 2 }
 0x1b2   :  { %v746_v19 = vmax.f32 %v744_v14, %v745_v17 }
 0x1b4   :  { %v747_v20 = vrot.slane %v746_v19, 1 }
 0x1b6   :  { %v748_v23 = vmax.f32 %v746_v19, %v747_v20 }
 0x1b8   :  { %v770_v24 = vsel %vm769_vm7, %v748_v23, %v768_v6 }
 0x1b9   :  { %v781_v25 = vsel %vm780_vm8, %v770_v24, -inf }
 0x1ba   :  { %782 = vmax.xlane.f32.xlu0 %v781_v25 }
 0x22d   :  { %v783_v26 = vpop.xlane.xlu0 %782 }
 0x22e   :  { %v784_v27 = vsub.f32 %v781_v25, %v783_v26 }
 0x230   :  { %v785_v28 = vmul.f32 1.442695, %v784_v27 }
 0x232   :  { %955 = vpow2.f32 %v785_v28 }
 0x238   :  { %v956_v29 = vpop.eup %955 }
 0x239   :  { %v787_v30 = vsel %vm780_vm8, %v956_v29, 0.0 }
 0x23a   :  { %788 = vadd.xlane.f32.xlu0 %v787_v30 }
 0x2ad   :  { %v789_v31 = vpop.xlane.xlu0 %788 }
 0x2ae   :  { %957 = vrcp.f32 %v789_v31  ;;  %v801_v35 = vand.u32 2147483648, %v789_v31  ;;  %v799_v37 = vand.u32 2147483647, %v789_v31  ;;  %vm795_vm10 = vweird.f32 %v789_v31 }
 0x2b0   :  { %v802_v40 = vor.u32 1.1754944e-38, %v801_v35  ;;  %vm800_vm12 = vcmp.eq.f32.partialorder %v799_v37, 8.507059e+37 }
 0x2b4   :  { %v958_v32 = vpop.eup %957 }
 0x2b5   :  { %v791_v33 = vmul.f32 %v958_v32, %v789_v31  ;;  %vm796_vm9 = vweird.f32 %v958_v32 }
 0x2b6   :  { %vm797_vm11 = vmor %vm795_vm10, %vm796_vm9 }
 0x2b7   :  { %v792_v34 = vsub.f32 1.0, %v791_v33 }
 0x2b9   :  { %v793_v36 = vmul.f32 %v958_v32, %v792_v34 }
 0x2bb   :  { %v794_v38 = vadd.f32 %v958_v32, %v793_v36 }
 0x2bd   :  { %v798_v41 = vsel %vm797_vm11, %v958_v32, %v794_v38 }
 0x2be   :  { %v803_v42 = vsel %vm800_vm12, %v802_v40, %v798_v41 }
 0x2bf   :  { %v804_v43 = vmul.f32 %v803_v42, %v787_v30 }
 0x2c1   :  { %805 = vst [vmem:[#allocation8] sm:$0xff] %v804_v43 }
 0x2c2   :  { %816 = dma.vmem_to_hbm [thread:$0]  %s812_s12, 128, %s814_s15, [#allocation4]  }
 0x2c3   :  { %1059 = dma.done.wait [#allocation4], 128  }
 0x2c4   :  { %1060 = vsyncadd [#allocation4], 4294967168 }
 0x2c5   :  { %821 = vsyncpa [#allocation3], 1 }
 0x2c6   :  { %822 = vsyncpa [#allocation6], 1 }
 0x2c7   :  { %823 = vsyncpa [#allocation4], 1 }

</bundles_post_ra>
